<compile_context>
chip_gen: v7x
topology: tpu7x:2x2x1
jax: 0.10.0
libtpu: 0.0.40
codegen_flags: <defaults>
</compile_context>

<pallas_src>
import functools

import jax
import jax.numpy as jnp
from jax.experimental import pallas as pl
from jax.experimental.pallas import tpu as pltpu

FEAT = 28 * 28   # 784
NCLS = 10        # real class count
NPAD = 128       # lane-dense padded class dim used for in-kernel compute


def _round_up(x, m):
    return (x + m - 1) // m * m


def _pick_tile(b, tile):
    """Batch tile that never exceeds b and always satisfies the (8,128) rule:
    either the full batch (single full-dim block) or a multiple of 8."""
    tile = max(8, _round_up(tile, 8))
    return b if b <= tile else tile


def _linear_partial_kernel(x_ref, wT_ref, y_ref, m_ref, l_ref, *, batch, tile_m):
    """Pass 1 (one batch tile): y = x @ W^T (bias cancels in log_softmax over
    dim=0); write un-normalized logits plus per-tile per-class (max, sum-exp)
    partials so the grid axis is fully parallel (no cross-step state)."""
    i = pl.program_id(0)

    # In-kernel f32 -> bf16 cast (VPU, hidden under the tile DMA), then MXU
    # matmul with f32 accumulation on the lane-dense padded class dim.
    x_bf = x_ref[...].astype(jnp.bfloat16)
    y = jnp.dot(x_bf, wT_ref[...], preferred_element_type=jnp.float32)

    # Un-normalized logits out (only the 10 real classes leave the kernel);
    # rows of the ragged last block past the true batch are discarded by
    # Pallas on writeback.
    y_ref[...] = y[:, :NCLS]

    # Mask rows >= batch so ragged-tail garbage cannot touch the statistics.
    row = i * tile_m + jax.lax.broadcasted_iota(jnp.int32, y.shape, 0)
    y_m = jnp.where(row < batch, y, -jnp.inf)

    m_i = jnp.max(y_m, axis=0, keepdims=True)                    # (1, NPAD)
    l_i = jnp.sum(jnp.exp(y_m - m_i), axis=0, keepdims=True)     # (1, NPAD)
    m_ref[...] = m_i[:, :NCLS].reshape(1, 1, NCLS)
    l_ref[...] = l_i[:, :NCLS].reshape(1, 1, NCLS)


def _normalize_kernel(y_ref, stats_ref, o_ref):
    """Pass 2: log_softmax over dim=0 is y - (per-class logsumexp)."""
    o_ref[...] = y_ref[...] - stats_ref[...]


def netlin_forward(x_nchw, weight, bias, *, tile_m=4096):
    """x_nchw: (B, 1, 28, 28) f32; weight: (10, 784); bias: (10,) -> (B, 10).

    `bias` is accepted for API parity but never added: log_softmax over dim=0
    subtracts a per-class logsumexp, so a per-class bias cancels exactly.
    """
    del bias
    B = x_nchw.shape[0]
    # Contiguous reshape only (free metadata op) -- no dtype cast, no pad.
    x2 = x_nchw.reshape(B, FEAT)

    tm = _pick_tile(B, tile_m)
    n_tiles = (B + tm - 1) // tm

    # Lane-dense (128-class) weight for the MXU tile (tiny, ~200 KiB); the
    # zero columns are sliced off before anything is written back to HBM.
    wT = jnp.zeros((FEAT, NPAD), jnp.bfloat16)
    wT = wT.at[:, :NCLS].set(weight.T.astype(jnp.bfloat16))

    kernel1 = functools.partial(_linear_partial_kernel, batch=B, tile_m=tm)
    y_logits, m_part, l_part = pl.pallas_call(
        kernel1,
        out_shape=(
            jax.ShapeDtypeStruct((B, NCLS), jnp.float32),
            jax.ShapeDtypeStruct((n_tiles, 1, NCLS), jnp.float32),
            jax.ShapeDtypeStruct((n_tiles, 1, NCLS), jnp.float32),
        ),
        grid_spec=pltpu.PrefetchScalarGridSpec(
            num_scalar_prefetch=0,
            grid=(n_tiles,),
            in_specs=[
                pl.BlockSpec((tm, FEAT), lambda i: (i, 0)),     # x tile stream
                pl.BlockSpec((FEAT, NPAD), lambda i: (0, 0)),   # resident W^T
            ],
            out_specs=[
                pl.BlockSpec((tm, NCLS), lambda i: (i, 0)),       # logits
                pl.BlockSpec((1, 1, NCLS), lambda i: (i, 0, 0)),  # tile max
                pl.BlockSpec((1, 1, NCLS), lambda i: (i, 0, 0)),  # tile sumexp
            ]),
        compiler_params=pltpu.CompilerParams(
            # No cross-step state -> batch axis is parallel; on v7x both
            # TensorCores (and the full chip HBM BW) can chew the batch.
            dimension_semantics=("parallel",),
            vmem_limit_bytes=48 * 1024 * 1024),
        cost_estimate=pl.CostEstimate(
            flops=2 * B * FEAT * NPAD,
            transcendentals=B * NPAD,
            bytes_accessed=(B * FEAT * 4 + FEAT * NPAD * 2
                            + B * NCLS * 4 + 2 * n_tiles * NCLS * 4)),
    )(x2, wT)

    # Tiny cross-tile combine (n_tiles x 10 elements) in XLA: global per-class
    # logsumexp from the per-tile (max, sum-exp) partials.
    m_p = m_part[:, 0, :]                                        # (T, 10)
    l_p = l_part[:, 0, :]
    m_g = jnp.max(m_p, axis=0, keepdims=True)                    # (1, 10)
    stats = m_g + jnp.log(
        jnp.sum(l_p * jnp.exp(m_p - m_g), axis=0, keepdims=True))  # (1, 10)

    # Pass 2: own, much larger tile so per-grid-step overhead is negligible.
    tm2 = _pick_tile(B, 32768)
    out = pl.pallas_call(
        _normalize_kernel,
        out_shape=jax.ShapeDtypeStruct((B, NCLS), jnp.float32),
        grid_spec=pltpu.PrefetchScalarGridSpec(
            num_scalar_prefetch=0,
            grid=((B + tm2 - 1) // tm2,),
            in_specs=[
                pl.BlockSpec((tm2, NCLS), lambda i: (i, 0)),
                pl.BlockSpec((1, NCLS), lambda i: (0, 0)),
            ],
            out_specs=pl.BlockSpec((tm2, NCLS), lambda i: (i, 0))),
        compiler_params=pltpu.CompilerParams(
            dimension_semantics=("parallel",),
            vmem_limit_bytes=32 * 1024 * 1024),
        cost_estimate=pl.CostEstimate(
            flops=B * NCLS,
            transcendentals=0,
            bytes_accessed=2 * B * NCLS * 4 + NCLS * 4),
    )(y_logits, stats)

    return out


def reference_forward(x_nchw, weight, bias):
    """Pure-JAX reference with the same bf16 rounding of x/W as the kernel."""
    B = x_nchw.shape[0]
    x2 = x_nchw.reshape(B, -1).astype(jnp.bfloat16).astype(jnp.float32)
    w = weight.astype(jnp.bfloat16).astype(jnp.float32)
    y = jnp.dot(x2, w.T, precision=jax.lax.Precision.HIGHEST) + bias.astype(
        jnp.float32)
    return jax.nn.log_softmax(y, axis=0)


if __name__ == "__main__":
    key = jax.random.PRNGKey(0)
    kx, kw, kb = jax.random.split(key, 3)

    # Deterministic param init mimicking torch.nn.Linear(784, 10):
    # uniform(-1/sqrt(784), 1/sqrt(784)).
    bound = 1.0 / jnp.sqrt(784.0)
    weight = jax.random.uniform(kw, (10, 784), jnp.float32, -bound, bound)
    bias = jax.random.uniform(kb, (10,), jnp.float32, -bound, bound)

    # Small shape consistent with the module.
    B = 2
    x = jax.random.normal(kx, (B, 1, 28, 28), dtype=jnp.float32)
    out = jax.block_until_ready(netlin_forward(x, weight, bias))
    ref = reference_forward(x, weight, bias)
    assert out.shape == (B, 10)
    assert jnp.allclose(out, ref, atol=2e-4, rtol=2e-4), "mismatch (B=2)"

    # Multi-tile + ragged-tail path: exercises the parallel per-tile partial
    # stats, the XLA combine, and Pallas's ragged last-block read/write.
    B2 = 300
    x_big = jax.random.normal(kx, (B2, 1, 28, 28), dtype=jnp.float32)
    out2 = jax.block_until_ready(netlin_forward(x_big, weight, bias, tile_m=128))
    ref2 = reference_forward(x_big, weight, bias)
    assert out2.shape == (B2, 10)
    assert jnp.allclose(out2, ref2, atol=2e-4, rtol=2e-4), "mismatch (B=300)"

    print("KERNEL_OK")
</pallas_src>

<mosaic_0001>
module attributes {stable_mosaic.version = 11 : i64} {
  func.func @_linear_partial_kernel(%arg0: i32, %arg1: memref<2x784xf32, #tpu.memory_space<vmem>>, %arg2: memref<784x128xbf16, #tpu.memory_space<vmem>>, %arg3: memref<2x10xf32, #tpu.memory_space<vmem>>, %arg4: memref<1x1x10xf32, #tpu.memory_space<vmem>>, %arg5: memref<1x1x10xf32, #tpu.memory_space<vmem>>) attributes {dimension_semantics = [#tpu.dimension_semantics<parallel>], iteration_bounds = array<i64: 1>, scalar_prefetch = 0 : i64, scratch_operands = 0 : i64, tpu.core_type = #tpu.core_type<tc>, window_params = [{transform_indices = @transform_0, window_bounds = array<i64: 2, 784>}, {pipeline_mode = #tpu.pipeline_mode<synchronous>, transform_indices = @transform_1, window_bounds = array<i64: 784, 128>}, {transform_indices = @transform_2, window_bounds = array<i64: 2, 10>}, {transform_indices = @transform_3, window_bounds = array<i64: 1, 1, 10>}, {transform_indices = @transform_4, window_bounds = array<i64: 1, 1, 10>}]} {
    %c0 = arith.constant 0 : index
    %c0_0 = arith.constant 0 : index
    %0 = vector.load %arg1[%c0, %c0_0] : memref<2x784xf32, #tpu.memory_space<vmem>>, vector<2x784xf32>
    %1 = arith.truncf %0 : vector<2x784xf32> to vector<2x784xbf16>
    %c0_1 = arith.constant 0 : index
    %c0_2 = arith.constant 0 : index
    %2 = vector.load %arg2[%c0_1, %c0_2] : memref<784x128xbf16, #tpu.memory_space<vmem>>, vector<784x128xbf16>
    %cst = arith.constant dense<0.000000e+00> : vector<2x128xf32>
    %3 = tpu.matmul %1, %2, %cst {dimension_numbers = #tpu.dot_dimension_numbers<[1], [0], [0], [1], [0, 0, 1, 1], [], []>} : vector<2x784xbf16>, vector<784x128xbf16>, vector<2x128xf32> -> vector<2x128xf32>
    %4 = vector.extract_strided_slice %3 {offsets = [0, 0], sizes = [2, 10], strides = [1, 1]} : vector<2x128xf32> to vector<2x10xf32>
    %c0_3 = arith.constant 0 : index
    %c0_4 = arith.constant 0 : index
    %5 = vector.load %arg3[%c0_3, %c0_4] : memref<2x10xf32, #tpu.memory_space<vmem>>, vector<2x10xf32>
    tpu.vector_store %arg3[%c0_3, %c0_4], %4 {strides = array<i32>} : memref<2x10xf32, #tpu.memory_space<vmem>>, vector<2x10xf32>,
    %c2_i32 = arith.constant 2 : i32
    %6 = arith.muli %arg0, %c2_i32 : i32
    %7 = tpu.iota {dimensions = array<i32: 0>} : vector<2x128xi32>
    %8 = vector.broadcast %6 : i32 to vector<2x128xi32>
    %9 = arith.addi %8, %7 : vector<2x128xi32>
    %c2_i32_5 = arith.constant 2 : i32
    %10 = vector.broadcast %c2_i32_5 : i32 to vector<2x128xi32>
    %11 = arith.cmpi slt, %9, %10 : vector<2x128xi32>
    %cst_6 = arith.constant 0xFF800000 : f32
    %12 = vector.broadcast %cst_6 : f32 to vector<2x128xf32>
    %13 = arith.select %11, %3, %12 : vector<2x128xi1>, vector<2x128xf32>
    %cst_7 = arith.constant dense<0xFF800000> : vector<128xf32>
    %14 = vector.multi_reduction <maximumf>, %13, %cst_7 [0] : vector<2x128xf32> to vector<128xf32>
    %15 = vector.shape_cast %14 : vector<128xf32> to vector<1x128xf32>
    %16 = vector.broadcast %15 : vector<1x128xf32> to vector<2x128xf32>
    %17 = arith.subf %13, %16 : vector<2x128xf32>
    %18 = math.exp %17 : vector<2x128xf32>
    %cst_8 = arith.constant dense<0.000000e+00> : vector<128xf32>
    %19 = vector.multi_reduction <add>, %18, %cst_8 [0] : vector<2x128xf32> to vector<128xf32>
    %20 = vector.shape_cast %19 : vector<128xf32> to vector<1x128xf32>
    %21 = vector.extract_strided_slice %15 {offsets = [0, 0], sizes = [1, 10], strides = [1, 1]} : vector<1x128xf32> to vector<1x10xf32>
    %22 = vector.shape_cast %21 : vector<1x10xf32> to vector<1x1x10xf32>
    %c0_9 = arith.constant 0 : index
    %c0_10 = arith.constant 0 : index
    %c0_11 = arith.constant 0 : index
    %23 = vector.load %arg4[%c0_9, %c0_10, %c0_11] : memref<1x1x10xf32, #tpu.memory_space<vmem>>, vector<1x1x10xf32>
    tpu.vector_store %arg4[%c0_9, %c0_10, %c0_11], %22 {strides = array<i32>} : memref<1x1x10xf32, #tpu.memory_space<vmem>>, vector<1x1x10xf32>,
    %24 = vector.extract_strided_slice %20 {offsets = [0, 0], sizes = [1, 10], strides = [1, 1]} : vector<1x128xf32> to vector<1x10xf32>
    %25 = vector.shape_cast %24 : vector<1x10xf32> to vector<1x1x10xf32>
    %c0_12 = arith.constant 0 : index
    %c0_13 = arith.constant 0 : index
    %c0_14 = arith.constant 0 : index
    %26 = vector.load %arg5[%c0_12, %c0_13, %c0_14] : memref<1x1x10xf32, #tpu.memory_space<vmem>>, vector<1x1x10xf32>
    tpu.vector_store %arg5[%c0_12, %c0_13, %c0_14], %25 {strides = array<i32>} : memref<1x1x10xf32, #tpu.memory_space<vmem>>, vector<1x1x10xf32>,
    return
  }
  func.func @transform_0(%arg0: i32) -> (i32, i32) {
    %c0_i32 = arith.constant 0 : i32
    %c0_i32_0 = arith.constant 0 : i32
    return %arg0, %c0_i32 : i32, i32
  }
  func.func @transform_1(%arg0: i32) -> (i32, i32) {
    %c0_i32 = arith.constant 0 : i32
    %c0_i32_0 = arith.constant 0 : i32
    %c0_i32_1 = arith.constant 0 : i32
    return %c0_i32, %c0_i32_0 : i32, i32
  }
  func.func @transform_2(%arg0: i32) -> (i32, i32) {
    %c0_i32 = arith.constant 0 : i32
    %c0_i32_0 = arith.constant 0 : i32
    return %arg0, %c0_i32 : i32, i32
  }
  func.func @transform_3(%arg0: i32) -> (i32, i32, i32) {
    %c0_i32 = arith.constant 0 : i32
    %c0_i32_0 = arith.constant 0 : i32
    %c0_i32_1 = arith.constant 0 : i32
    return %arg0, %c0_i32, %c0_i32_0 : i32, i32, i32
  }
  func.func @transform_4(%arg0: i32) -> (i32, i32, i32) {
    %c0_i32 = arith.constant 0 : i32
    %c0_i32_0 = arith.constant 0 : i32
    %c0_i32_1 = arith.constant 0 : i32
    return %arg0, %c0_i32, %c0_i32_0 : i32, i32, i32
  }
}

</mosaic_0001>

<bundles_post_ra>
// kernel: tpu_custom_call.1
= control target key start
LH: loop header
LB: loop body
LE: loop exit
PB: predicated region body
PF: predicated region fallthrough
CT: control target
= control target key end

     0   :  { %10 = vsyncpa [#allocation3], 0  ;;  %s1138_s0 = inlined_call_operand.hbm [shape: f32[2,784], index: 0, kind: input, shape index: {}]   ;;  %s1139_s1 = inlined_call_operand.hbm [shape: bf16[784,128], index: 1, kind: input, shape index: {}]   ;;  %s1140_s2 = inlined_call_operand.hbm [shape: f32[2,10], index: 2, kind: output, shape index: {0}]   ;;  %s1141_s3 = inlined_call_operand.hbm [shape: f32[1,1,10], index: 3, kind: output, shape index: {1}]   ;;  %s1142_s4 = inlined_call_operand.hbm [shape: f32[1,1,10], index: 4, kind: output, shape index: {2}]  }
   0x1   :  { %11 = vsyncpa [#allocation6], 0 }
   0x2   :  { %12 = vsyncpa [#allocation4], 0 }
   0x3   :  { %13 = vsyncpa [#allocation9], 0  ;;  %s1028_s15 = smov [#allocation2]   ;;  %s1029_s17 = smov [#allocation5]  }
   0x4   :  { %s20_s16 = sshll.u32 %s1028_s15, 4  ;;  %s29_s18 = sshll.u32 %s1029_s17, 4  ;;  %s21_s16 = int_to_ptr.vmem [resolvable:$true] %s20_s16  ;;  %s1063_s18 = int_to_ptr.vmem [resolvable:$true] %s29_s18 }
   0x5   :  { %s910_s21 = scalar_lea.hbm %s1138_s0, 224 }
   0x6   :  { %p911_p0 = scmp.ne.s32.totalorder %s1138_s0, %s910_s21  ;;  %p914_p1 = scmp.lt.u32.totalorder %s910_s21, %s1138_s0 }
   0x8   :  { %p916_p2 = pnand %p914_p1, %p911_p0 }
   0xa   :  { %919 = shalt.err (!%p916_p2)
}
   0xb   :  { %s920_s26 = scalar_lea.vmem %s21_s16, 224  ;;  %p925_p4 = scmp.lt.s32.totalorder %s21_s16, %s21_s16 }
   0xc   :  { %p921_p3 = scmp.ne.s32.totalorder %s21_s16, %s920_s26  ;;  %p926_p5 = scmp.lt.s32.totalorder %s920_s26, %s920_s26 }
   0xe   :  { %p927_p6 = por %p926_p5, %p925_p4 }
  0x10   :  { %p928_p7 = pnand %p927_p6, %p921_p3 }
  0x12   :  { %931 = shalt.err (!%p928_p7)
}
  0x13   :  { %23 = dma.hbm_to_vmem [thread:$0]  %s1138_s0, 224, %s21_s16, [#allocation3]  }
  0x14   :  { %s932_s5 = scalar_lea.hbm %s1139_s1, 6272 }
  0x15   :  { %p933_p8 = scmp.ne.s32.totalorder %s1139_s1, %s932_s5  ;;  %p936_p9 = scmp.lt.u32.totalorder %s932_s5, %s1139_s1 }
  0x17   :  { %p938_p10 = pnand %p936_p9, %p933_p8 }
  0x19   :  { %941 = shalt.err (!%p938_p10)
}
  0x1a   :  { %s942_s10 = scalar_lea.vmem %s1063_s18, 6272  ;;  %p947_p12 = scmp.lt.s32.totalorder %s1063_s18, %s1063_s18 }
  0x1b   :  { %p943_p11 = scmp.ne.s32.totalorder %s1063_s18, %s942_s10  ;;  %p948_p13 = scmp.lt.s32.totalorder %s942_s10, %s942_s10 }
  0x1d   :  { %p949_p0 = por %p948_p13, %p947_p12 }
  0x1f   :  { %p950_p1 = pnand %p949_p0, %p943_p11 }
  0x21   :  { %953 = shalt.err (!%p950_p1)
}
  0x22   :  { %s1030_s0 = smov 64   ;;  %s1031_s11 = smov 4  }
  0x23   :  { %35 = dma.hbm_to_vmem [thread:$0]  %s1139_s1, 6272, %s1063_s18, [#allocation6], %s1030_s0, %s1030_s0, %s1031_s11  }
  0x24   :  { %1020 = dma.done.wait [#allocation3], 224  }
  0x25   :  { %1021 = vsyncadd [#allocation3], 4294967072 }
  0x26   :  { %1022 = dma.done.wait [#allocation6], 6272  }
  0x27   :  { %1023 = vsyncadd [#allocation6], 4294961024  ;;  %v857_v0 = vld [vmem:[#allocation5 + $0x40] sm:$0xff]   ;;  %v861_v4 = vld [vmem:[#allocation5 + $0x48] sm:$0xff]   ;;  %v1032_v22 = vmov 1983009808   ;;  %v51_v24 = vlaneseq }
  0x28   :  { %v858_v1 = vld [vmem:[#allocation5 + $0xc0] sm:$0xff]   ;;  %773 = vmatprep.subr.bf16.mxu0 %v857_v0  ;;  %v862_v5 = vld [vmem:[#allocation5 + $0xc8] sm:$0xff]   ;;  %v865_v8 = vld [vmem:[#allocation5 + $0x50] sm:$0xff]   ;;  %v49_v23 = vunpack.c.l.s4 %v1032_v22  ;;  %v1033_v42 = vmov 0.0   ;;  %vm1034_vm0 = vmmov 0   ;;  %vm486_vm1 = vcmask 130048  }
  0x29   :  { %v859_v2 = vld [vmem:[#allocation5] sm:$0xff]   ;;  %795 = vmatprep.subr.bf16.mxu1 %v858_v1  ;;  %v863_v6 = vld [vmem:[#allocation5 + $0x8] sm:$0xff]   ;;  %v866_v9 = vld [vmem:[#allocation5 + $0xd0] sm:$0xff]   ;;  %v1094_v30 = vshrl.u32 %v51_v24, 7  ;;  %s1035_s1 = smov [#allocation7]   ;;  %vm650_vm3 = vcmask 74752  }
  0x2a   :  { %v860_v3 = vld [vmem:[#allocation5 + $0x80] sm:$0xff]   ;;  %774 = vmatpush3.bf16.msra.mxu0 %v859_v2  ;;  %v864_v7 = vld [vmem:[#allocation5 + $0x88] sm:$0xff]   ;;  %v867_v10 = vld [vmem:[#allocation5 + $0x10] sm:$0xff]   ;;  %v50_v29 = vunpack.c.0.s8 %v49_v23  ;;  %s686_s14 = sshll.u32 %s1035_s1, 4  ;;  %vm659_vm4 = vcmask 1041408   ;;  %s687_s14 = int_to_ptr.vmem [resolvable:$true] %s686_s14 }
  0x2b   :  { %796 = vmatpush3.bf16.msra.mxu1 %v860_v3  ;;  %775 = vmatprep.subr.bf16.mxu0 %v861_v4  ;;  %v868_v11 = vld [vmem:[#allocation5 + $0x90] sm:$0xff]   ;;  %v869_v12 = vld [vmem:[#allocation5 + $0x58] sm:$0xff]   ;;  %v873_v16 = vld [vmem:[#allocation5 + $0x60] sm:$0xff]   ;;  %vm657_vm2 = vcmp.lt.s32.totalorder %v1094_v30, 2  ;;  %s954_s15 = scalar_lea.vmem %s687_s14, 32  ;;  %p959_p3 = scmp.lt.s32.totalorder %s687_s14, %s687_s14 }
  0x2c   :  { %797 = vmatprep.subr.bf16.mxu1 %v862_v5  ;;  %v870_v13 = vld [vmem:[#allocation5 + $0xd8] sm:$0xff]   ;;  %v874_v17 = vld [vmem:[#allocation5 + $0xe0] sm:$0xff]   ;;  %v877_v20 = vld [vmem:[#allocation5 + $0x68] sm:$0xff]   ;;  %v53_v35 = vsub.s32 %v50_v29, %v1094_v30  ;;  %p955_p2 = scmp.ne.s32.totalorder %s687_s14, %s954_s15  ;;  %p960_p4 = scmp.lt.s32.totalorder %s954_s15, %s954_s15 }
  0x2d   :  { %v871_v14 = vld [vmem:[#allocation5 + $0x18] sm:$0xff]   ;;  %v875_v18 = vld [vmem:[#allocation5 + $0x20] sm:$0xff]   ;;  %v878_v21 = vld [vmem:[#allocation5 + $0xe8] sm:$0xff]  }
  0x2e   :  { %776 = vmatpush3.bf16.msra.mxu0 %v863_v6  ;;  %v872_v15 = vld [vmem:[#allocation5 + $0x98] sm:$0xff]   ;;  %v876_v19 = vld [vmem:[#allocation5 + $0xa0] sm:$0xff]   ;;  %v879_v25 = vld [vmem:[#allocation5 + $0x28] sm:$0xff]   ;;  %p961_p5 = por %p960_p4, %p959_p3 }
  0x2f   :  { %798 = vmatpush3.bf16.msra.mxu1 %v864_v7  ;;  %777 = vmatprep.subr.bf16.mxu0 %v865_v8  ;;  %v880_v26 = vld [vmem:[#allocation5 + $0xa8] sm:$0xff]   ;;  %v881_v27 = vld [vmem:[#allocation5 + $0x70] sm:$0xff]   ;;  %v885_v33 = vld [vmem:[#allocation5 + $0x78] sm:$0xff]  }
  0x30   :  { %799 = vmatprep.subr.bf16.mxu1 %v866_v9  ;;  %v882_v28 = vld [vmem:[#allocation5 + $0xf0] sm:$0xff]   ;;  %v886_v34 = vld [vmem:[#allocation5 + $0xf8] sm:$0xff]   ;;  %v890_v41 = vld [vmem:[#allocation5 + $0x140] sm:$0xff]   ;;  %p962_p6 = pnand %p961_p5, %p955_p2 }
  0x31   :  { %v883_v31 = vld [vmem:[#allocation5 + $0x30] sm:$0xff]   ;;  %v887_v36 = vld [vmem:[#allocation5 + $0x38] sm:$0xff]   ;;  %v891_v48 = vld [vmem:[#allocation5 + $0x100] sm:$0xff]  }
  0x32   :  { %778 = vmatpush3.bf16.msra.mxu0 %v867_v10  ;;  %v884_v32 = vld [vmem:[#allocation5 + $0xb0] sm:$0xff]   ;;  %v888_v37 = vld [vmem:[#allocation5 + $0xb8] sm:$0xff]   ;;  %v892_v50 = vld [vmem:[#allocation5 + $0x148] sm:$0xff]  }
  0x33   :  { %800 = vmatpush3.bf16.msra.mxu1 %v868_v11  ;;  %779 = vmatprep.subr.bf16.mxu0 %v869_v12  ;;  %v43_v38 = vld [vmem:[#allocation2] sm:$0xff]  ;;  %v893_v52 = vld [vmem:[#allocation5 + $0x108] sm:$0xff]   ;;  %v906_v57 = vld [vmem:[#allocation5 + $0x180] sm:$0xff]  }
  0x34   :  { %801 = vmatprep.subr.bf16.mxu1 %v870_v13  ;;  %v54_v39 = vrot.slane %v43_v38, %v53_v35  ;;  %v47_v40 = vcombine.high %v43_v38, %v43_v38  ;;  %v894_v53 = vld [vmem:[#allocation5 + $0x150] sm:$0xff]   ;;  %v896_v55 = vld [vmem:[#allocation5 + $0x158] sm:$0xff]   ;;  %v898_v59 = vld [vmem:[#allocation5 + $0x160] sm:$0xff]  }
  0x35   :  { %v895_v54 = vld [vmem:[#allocation5 + $0x110] sm:$0xff]   ;;  %v897_v56 = vld [vmem:[#allocation5 + $0x118] sm:$0xff]   ;;  %v899_v0 = vld [vmem:[#allocation5 + $0x120] sm:$0xff]  }
  0x36   :  { %780 = vmatpush3.bf16.msra.mxu0 %v871_v14  ;;  %v62_v43 = vcombine.high %v54_v39, %v54_v39  ;;  %v61_v44 = vrot.slane %v47_v40, %v53_v35  ;;  %v87_v45 = vpack.c.bf16 %v54_v39, %v54_v39  ;;  %v44_v58 = vld [vmem:[#allocation2 + $0x8] sm:$0x3f]  ;;  %v900_v1 = vld [vmem:[#allocation5 + $0x168] sm:$0xff]   ;;  %v902_v5 = vld [vmem:[#allocation5 + $0x170] sm:$0xff]  }
  0x37   :  { %802 = vmatpush3.bf16.msra.mxu1 %v872_v15  ;;  %781 = vmatprep.subr.bf16.mxu0 %v873_v16  ;;  %v64_v60 = vcombine.high %v44_v58, %v44_v58  ;;  %v71_v61 = vrot.slane %v44_v58, %v53_v35  ;;  %v901_v4 = vld [vmem:[#allocation5 + $0x128] sm:$0xff]   ;;  %v903_v6 = vld [vmem:[#allocation5 + $0x130] sm:$0xff]   ;;  %v904_v7 = vld [vmem:[#allocation5 + $0x178] sm:$0xff]  }
  0x38   :  { %803 = vmatprep.subr.bf16.mxu1 %v874_v17  ;;  %v88_v46 = vpack.c.bf16 %v62_v43, %v62_v43  ;;  %v63_v47 = vcombine.high %v61_v44, %v61_v44  ;;  %v89_v49 = vpack.c.bf16 %v61_v44, %v61_v44  ;;  %v905_v8 = vld [vmem:[#allocation5 + $0x138] sm:$0xff]  }
  0x39   :  { %v78_v62 = vrot.slane %v64_v60, %v53_v35  ;;  %v79_v63 = vcombine.high %v71_v61, %v71_v61  ;;  %v91_v9 = vpack.c.bf16 %v71_v61, %v71_v61 }
  0x3a   :  { %782 = vmatpush3.bf16.msra.mxu0 %v875_v18  ;;  %522 = vmatprep.mubr.bf16.mxu0 %v88_v46  ;;  %v90_v51 = vpack.c.bf16 %v63_v47, %v63_v47 }
  0x3b   :  { %804 = vmatpush3.bf16.msra.mxu1 %v876_v19  ;;  %783 = vmatprep.subr.bf16.mxu0 %v877_v20  ;;  %v92_v2 = vpack.c.bf16 %v79_v63, %v79_v63  ;;  %v93_v3 = vpack.c.bf16 %v78_v62, %v78_v62 }
  0x3c   :  { %805 = vmatprep.subr.bf16.mxu1 %v878_v21  ;;  %562 = vmatprep.mubr.bf16.mxu1 %v90_v51 }
  0x3e   :  { %784 = vmatpush3.bf16.msra.mxu0 %v879_v25 }
  0x3f   :  { %806 = vmatpush3.bf16.msra.mxu1 %v880_v26  ;;  %785 = vmatprep.subr.bf16.mxu0 %v881_v27 }
  0x40   :  { %807 = vmatprep.subr.bf16.mxu1 %v882_v28 }
  0x42   :  { %786 = vmatpush3.bf16.msra.mxu0 %v883_v31 }
  0x43   :  { %808 = vmatpush3.bf16.msra.mxu1 %v884_v32  ;;  %787 = vmatprep.subr.bf16.mxu0 %v885_v33 }
  0x44   :  { %809 = vmatprep.subr.bf16.mxu1 %v886_v34 }
  0x46   :  { %788 = vmatpush3.bf16.msra.mxu0 %v887_v36 }
  0x47   :  { %810 = vmatpush3.bf16.msra.mxu1 %v888_v37  ;;  %817 = vmatprep.subr.bf16.mxu0 %v890_v41 }
  0x48   :  { %841 = vmatprep.subr.bf16.mxu1 %v1033_v42 }
  0x49   :  { %523 = vmatmul.mubr.bf16.vlgmr.msra.gmra.mrb[0].mxu0 %v87_v45 }
  0x4a   :  { %818 = vmatpush3.bf16.msra.mxu0 %v891_v48  ;;  %563 = vmatmul.mubr.bf16.vlgmr.msra.gmra.mrb[0].mxu1 %v89_v49 }
  0x4b   :  { %819 = vmatprep.subr.bf16.mxu0 %v892_v50  ;;  %843 = vmatprep.mubr.msk.bf16.mxu1 %vm1034_vm0, %v1033_v42 }
  0x4c   :  { %842 = vmatpush3.bf16.msra.mxu1 %v906_v57  ;;  %602 = vmatprep.mubr.bf16.mxu0 %v92_v2 }
  0x4e   :  { %820 = vmatpush3.bf16.msra.mxu0 %v893_v52 }
  0x4f   :  { %821 = vmatprep.subr.bf16.mxu0 %v894_v53 }
  0x52   :  { %822 = vmatpush3.bf16.msra.mxu0 %v895_v54  ;;  %844 = vmatmul.mubr.msk.bf16.vlgmr.msra.gmra.mrb[4].mxu1 %vm486_vm1, %v93_v3 }
  0x53   :  { %823 = vmatprep.subr.bf16.mxu0 %v896_v55 }
  0x56   :  { %824 = vmatpush3.bf16.msra.mxu0 %v897_v56 }
  0x57   :  { %825 = vmatprep.subr.bf16.mxu0 %v898_v59 }
  0x5a   :  { %826 = vmatpush3.bf16.msra.mxu0 %v899_v0 }
  0x5b   :  { %827 = vmatprep.subr.bf16.mxu0 %v900_v1 }
  0x5e   :  { %828 = vmatpush3.bf16.msra.mxu0 %v901_v4 }
  0x5f   :  { %829 = vmatprep.subr.bf16.mxu0 %v902_v5 }
  0x62   :  { %830 = vmatpush3.bf16.msra.mxu0 %v903_v6 }
  0x63   :  { %831 = vmatprep.subr.bf16.mxu0 %v904_v7 }
  0x66   :  { %832 = vmatpush3.bf16.msra.mxu0 %v905_v8 }
  0x69   :  { %603 = vmatmul.mubr.bf16.vlgmr.msra.gmra.mrb[4].mxu0 %v91_v9 }
 0x11c   :  { %v789_v10 = vpop.f32.mrb[0].mxu0 }
 0x11d   :  { %v790_v11 = vpop.f32.mrb[1].mxu0  ;;  %v811_v12 = vpop.f32.mrb[0].mxu1 }
 0x11e   :  { %v791_v13 = vadd.f32 %v790_v11, %v789_v10  ;;  %v792_v14 = vpop.f32.mrb[2].mxu0  ;;  %v812_v15 = vpop.f32.mrb[1].mxu1 }
 0x11f   :  { %v793_v16 = vpop.f32.mrb[3].mxu0  ;;  %v813_v17 = vadd.f32 %v812_v15, %v811_v12  ;;  %v814_v18 = vpop.f32.mrb[2].mxu1 }
 0x120   :  { %v815_v19 = vpop.f32.mrb[3].mxu1 }
 0x121   :  { %v565_v20 = vadd.f32 %v813_v17, %v791_v13 }
 0x125   :  { %v644_v21 = vpop.f32.mrb[4].mxu1 }
 0x126   :  { %v845_v22 = vpop.f32.mrb[5].mxu1 }
 0x127   :  { %v647_v23 = vpop.f32.mrb[6].mxu1 }
 0x128   :  { %v846_v24 = vpop.f32.mrb[7].mxu1 }
 0x13c   :  { %v833_v25 = vpop.f32.mrb[4].mxu0 }
 0x13d   :  { %v834_v26 = vpop.f32.mrb[5].mxu0 }
 0x13e   :  { %v835_v27 = vadd.f32 %v834_v26, %v833_v25  ;;  %v836_v28 = vpop.f32.mrb[6].mxu0 }
 0x13f   :  { %v837_v29 = vpop.f32.mrb[7].mxu0 }
 0x140   :  { %v605_v31 = vadd.f32 %v835_v27, %v565_v20 }
 0x142   :  { %v645_v32 = vadd.f32 %v644_v21, %v605_v31 }
 0x144   :  { %v658_v33 = vsel %vm657_vm2, %v645_v32, -inf  ;;  %651 = vst.msk [vmem:[#allocation7] sm:$0x3] %vm650_vm3, %v645_v32 }
 0x145   :  { %v660_v34 = vsel %vm659_vm4, %v658_v33, -inf }
 0x146   :  { %965 = shalt.err (!%p962_p6)
}
 0x147   :  { %s966_s18 = scalar_lea.hbm %s1140_s2, 32 }
 0x148   :  { %p967_p7 = scmp.ne.s32.totalorder %s1140_s2, %s966_s18  ;;  %p970_p8 = scmp.lt.u32.totalorder %s966_s18, %s1140_s2 }
 0x14a   :  { %p972_p9 = pnand %p970_p8, %p967_p7 }
 0x14c   :  { %975 = shalt.err (!%p972_p9)
}
 0x14d   :  { %689 = dma.vmem_to_hbm [thread:$0]  %s687_s14, 32, %s1140_s2, [#allocation4]   ;;  %v661_v30 = vrot.slane %v660_v34, 4  ;;  %vm677_vm5 = vcmask 73728  }
 0x14e   :  { %s1036_s25 = smov [#allocation8]  }
 0x14f   :  { %v662_v35 = vmax.f32 %v660_v34, %v661_v30  ;;  %s696_s26 = sshll.u32 %s1036_s25, 4  ;;  %s697_s26 = int_to_ptr.vmem [resolvable:$true] %s696_s26 }
 0x150   :  { %s976_s27 = scalar_lea.vmem %s697_s26, 16  ;;  %s980_s28 = scalar_lea.vmem %s697_s26, 32 }
 0x151   :  { %v663_v36 = vrot.slane %v662_v35, 2  ;;  %p977_p10 = scmp.ne.s32.totalorder %s697_s26, %s976_s27  ;;  %p981_p11 = scmp.lt.s32.totalorder %s697_s26, %s697_s26 }
 0x152   :  { %p982_p12 = scmp.lt.s32.totalorder %s980_s28, %s976_s27 }
 0x153   :  { %v664_v37 = vmax.f32 %v662_v35, %v663_v36 }
 0x154   :  { %p983_p13 = por %p982_p12, %p981_p11 }
 0x155   :  { %v665_v38 = vrot.slane %v664_v37, 1 }
 0x156   :  { %p984_p0 = pnand %p983_p13, %p977_p10 }
 0x157   :  { %v666_v39 = vmax.f32 %v664_v37, %v665_v38 }
 0x159   :  { %v667_v40 = vsub.f32 %v658_v33, %v666_v39  ;;  %678 = vst.msk [vmem:[#allocation8] sm:$0x1] %vm677_vm5, %v666_v39 }
 0x15a   :  { %987 = shalt.err (!%p984_p0)
}
 0x15b   :  { %s988_s30 = scalar_lea.hbm %s1141_s3, 16 }
 0x15c   :  { %p989_p1 = scmp.ne.s32.totalorder %s1141_s3, %s988_s30  ;;  %p992_p2 = scmp.lt.u32.totalorder %s988_s30, %s1141_s3 }
 0x15e   :  { %p994_p3 = pnand %p992_p2, %p989_p1 }
 0x160   :  { %997 = shalt.err (!%p994_p3)
}
 0x161   :  { %699 = dma.vmem_to_hbm [thread:$0]  %s697_s26, 16, %s1141_s3, [#allocation9]   ;;  %v668_v41 = vmul.f32 1.442695, %v667_v40 }
 0x162   :  { %s1037_s0 = smov [#allocation10]  }
 0x163   :  { %908 = vpow2.f32 %v668_v41  ;;  %s706_s11 = sshll.u32 %s1037_s0, 4  ;;  %s707_s11 = int_to_ptr.vmem [resolvable:$true] %s706_s11 }
 0x164   :  { %s998_s12 = scalar_lea.vmem %s707_s11, 16  ;;  %s1002_s13 = scalar_lea.vmem %s707_s11, 32 }
 0x165   :  { %p999_p4 = scmp.ne.s32.totalorder %s707_s11, %s998_s12  ;;  %p1003_p5 = scmp.lt.s32.totalorder %s707_s11, %s707_s11 }
 0x166   :  { %p1004_p6 = scmp.lt.s32.totalorder %s1002_s13, %s998_s12 }
 0x168   :  { %p1005_p7 = por %p1004_p6, %p1003_p5 }
 0x16a   :  { %p1006_p8 = pnand %p1005_p7, %p999_p4 }
 0x16d   :  { %v909_v42 = vpop.eup %908 }
 0x16e   :  { %v670_v43 = vsel %vm659_vm4, %v909_v42, 0.0 }
 0x16f   :  { %v671_v44 = vrot.slane %v670_v43, 4 }
 0x171   :  { %v672_v45 = vadd.f32 %v671_v44, %v670_v43 }
 0x173   :  { %v673_v46 = vrot.slane %v672_v45, 2 }
 0x175   :  { %v674_v47 = vadd.f32 %v673_v46, %v672_v45 }
 0x177   :  { %v675_v48 = vrot.slane %v674_v47, 1 }
 0x179   :  { %v676_v49 = vadd.f32 %v675_v48, %v674_v47 }
 0x17b   :  { %679 = vst.msk [vmem:[#allocation10] sm:$0x1] %vm677_vm5, %v676_v49 }
 0x17c   :  { %1009 = shalt.err (!%p1006_p8)
}
 0x17d   :  { %s1010_s14 = scalar_lea.hbm %s1142_s4, 16 }
 0x17e   :  { %p1011_p9 = scmp.ne.s32.totalorder %s1142_s4, %s1010_s14  ;;  %p1014_p10 = scmp.lt.u32.totalorder %s1010_s14, %s1142_s4 }
 0x180   :  { %p1016_p11 = pnand %p1014_p10, %p1011_p9 }
 0x182   :  { %1019 = shalt.err (!%p1016_p11)
}
 0x183   :  { %709 = dma.vmem_to_hbm [thread:$0]  %s707_s11, 16, %s1142_s4, [#allocation9]  }
 0x184   :  { %1024 = dma.done.wait [#allocation4], 32  }
 0x185   :  { %1025 = vsyncadd [#allocation4], 4294967264 }
 0x186   :  { %1026 = dma.done.wait [#allocation9], 32  }
 0x187   :  { %1027 = vsyncadd [#allocation9], 4294967264 }
 0x188   :  { %719 = vsyncpa [#allocation3], 1 }
 0x189   :  { %720 = vsyncpa [#allocation6], 1 }
 0x18a   :  { %721 = vsyncpa [#allocation4], 1 }
 0x18b   :  { %722 = vsyncpa [#allocation9], 1 }

</bundles_post_ra>
